<compile_context>
chip_gen: v7x
topology: tpu7x:2x2x1
jax: 0.10.0
libtpu: 0.0.40
codegen_flags: <defaults>
</compile_context>

<pallas_src>
import jax
import jax.numpy as jnp
from jax.experimental import pallas as pl
from jax.experimental.pallas import tpu as pltpu


def icm_kernel(state_ref, action_ref, next_ref,
               w1_s_ref, w1f_a_ref, b1f_ref, w2f_ref, b2f_ref,
               w1i_n_ref, b1i_ref, w2i_ref, b2i_ref,
               pred_ref, partial_ref):
    H = b1f_ref.shape[1]

    s = state_ref[...]                        # (TB, S) f32
    a = action_ref[...]                       # (TB, A) f32
    ns = next_ref[...]                        # (TB, S) f32

    s_bf = s.astype(jnp.bfloat16)
    a_bf = a.astype(jnp.bfloat16)
    ns_bf = ns.astype(jnp.bfloat16)

    # Fused first-layer matmul for the shared `state` LHS:
    #   y[:, :H] -> forward-model hidden contribution
    #   y[:, H:] -> inverse-model hidden contribution
    y = jnp.dot(s_bf, w1_s_ref[...], preferred_element_type=jnp.float32)

    # ---- forward model: Linear(S+A, H) -> ReLU -> Linear(H, S) ----
    h = (y[:, :H]
         + jnp.dot(a_bf, w1f_a_ref[...], preferred_element_type=jnp.float32)
         + b1f_ref[...])
    h = jnp.maximum(h, 0.0)
    pred = (jnp.dot(h.astype(jnp.bfloat16), w2f_ref[...],
                    preferred_element_type=jnp.float32)
            + b2f_ref[...])
    pred_ref[...] = pred

    # forward_loss partial: sum of squared error over this batch block.
    diff = pred - ns
    f_part = jnp.sum(jnp.sum(diff * diff, axis=1, keepdims=True),
                     axis=0, keepdims=True)                      # (1, 1)

    # ---- inverse model: Linear(2S, H) -> ReLU -> Linear(H, A) ----
    hi = (y[:, H:]
          + jnp.dot(ns_bf, w1i_n_ref[...], preferred_element_type=jnp.float32)
          + b1i_ref[...])
    hi = jnp.maximum(hi, 0.0)
    logits = (jnp.dot(hi.astype(jnp.bfloat16), w2i_ref[...],
                      preferred_element_type=jnp.float32)
              + b2i_ref[...])

    # inverse_loss partial: cross_entropy(logits, argmax(action)).
    # `action` is one-hot (standard ICM usage), so the target logit equals
    # sum(logits * action) — identical to torch's argmax-target gather for
    # one-hot actions, and avoids an in-kernel argmax / iota / select.
    m = jnp.max(logits, axis=1, keepdims=True)
    lse = m + jnp.log(jnp.sum(jnp.exp(logits - m), axis=1, keepdims=True))
    tgt_logit = jnp.sum(logits * a, axis=1, keepdims=True)
    i_part = jnp.sum(lse - tgt_logit, axis=0, keepdims=True)     # (1, 1)

    # Emit both partial sums in one aligned (8, 128) tile (full unmasked vst):
    # lane 0 = forward-loss partial, lane 1 = inverse-loss partial.
    lane = jax.lax.broadcasted_iota(jnp.int32, partial_ref.shape, 1)
    partial_ref[...] = (jnp.where(lane == 0, f_part, 0.0)
                        + jnp.where(lane == 1, i_part, 0.0))


def icm_forward(state, action, next_state, params, *, block_b=128):
    B, S = state.shape
    A = action.shape[1]
    (w1_s, w1f_a, b1f, w2f, b2f, w1i_n, b1i, w2i, b2i) = params

    tb = min(block_b, B)
    if tb != B and (B % tb != 0 or tb % 8 != 0):
        tb = B                       # fall back to a single whole-batch block
    nblk = B // tb

    row = lambda i: (i, 0)
    const = lambda i: (0, 0)

    weight_specs = [pl.BlockSpec(w.shape, const)
                    for w in (w1_s, w1f_a, b1f, w2f, b2f, w1i_n, b1i, w2i, b2i)]

    pred, partials = pl.pallas_call(
        icm_kernel,
        out_shape=(jax.ShapeDtypeStruct((B, S), jnp.float32),
                   jax.ShapeDtypeStruct((8 * nblk, 128), jnp.float32)),
        grid=(nblk,),
        in_specs=[pl.BlockSpec((tb, S), row),
                  pl.BlockSpec((tb, A), row),
                  pl.BlockSpec((tb, S), row)] + weight_specs,
        out_specs=(pl.BlockSpec((tb, S), row),
                   pl.BlockSpec((8, 128), row)),
        compiler_params=pltpu.CompilerParams(
            dimension_semantics=("parallel",),
            vmem_limit_bytes=32 * 1024 * 1024),
    )(state, action, next_state, *params)

    # Finish the means in the wrapper (partial sums were per batch block).
    forward_loss = jnp.sum(partials[::8, 0]) / (B * S)
    inverse_loss = jnp.sum(partials[::8, 1]) / B
    return pred, forward_loss, inverse_loss


def init_params(key, state_dim, action_dim, hidden_dim):
    ks = jax.random.split(key, 4)

    def lin(k, fan_in, fan_out):
        kw, kb = jax.random.split(k)
        bound = 1.0 / jnp.sqrt(jnp.float32(fan_in))
        w = jax.random.uniform(kw, (fan_in, fan_out), jnp.float32, -bound, bound)
        b = jax.random.uniform(kb, (1, fan_out), jnp.float32, -bound, bound)
        return w, b

    w1f, b1f = lin(ks[0], state_dim + action_dim, hidden_dim)   # [S+A, H]
    w2f, b2f = lin(ks[1], hidden_dim, state_dim)                # [H, S]
    w1i, b1i = lin(ks[2], state_dim * 2, hidden_dim)            # [2S, H]
    w2i, b2i = lin(ks[3], hidden_dim, action_dim)               # [H, A]

    bf = jnp.bfloat16
    # Split first layers so cat(..., dim=1) @ W becomes a sum of matmuls, and
    # fuse the two state-consuming halves into one [S, 2H] matrix.
    w1_s = jnp.concatenate([w1f[:state_dim], w1i[:state_dim]], axis=1).astype(bf)
    w1f_a = w1f[state_dim:].astype(bf)          # [A, H]
    w1i_n = w1i[state_dim:].astype(bf)          # [S, H]
    return (w1_s, w1f_a, b1f, w2f.astype(bf), b2f,
            w1i_n, b1i, w2i.astype(bf), b2i)


def icm_reference(state, action, next_state, params):
    (w1_s, w1f_a, b1f, w2f, b2f, w1i_n, b1i, w2i, b2i) = params
    H = b1f.shape[1]
    bf = jnp.bfloat16
    y = jnp.dot(state.astype(bf), w1_s, preferred_element_type=jnp.float32)
    h = jnp.maximum(
        y[:, :H] + jnp.dot(action.astype(bf), w1f_a,
                           preferred_element_type=jnp.float32) + b1f, 0.0)
    pred = jnp.dot(h.astype(bf), w2f, preferred_element_type=jnp.float32) + b2f
    floss = jnp.mean((pred - next_state) ** 2)
    hi = jnp.maximum(
        y[:, H:] + jnp.dot(next_state.astype(bf), w1i_n,
                           preferred_element_type=jnp.float32) + b1i, 0.0)
    logits = jnp.dot(hi.astype(bf), w2i, preferred_element_type=jnp.float32) + b2i
    tgt = jnp.argmax(action, axis=1)
    lse = jax.scipy.special.logsumexp(logits, axis=1)
    tgt_logit = jnp.take_along_axis(logits, tgt[:, None], axis=1)[:, 0]
    iloss = jnp.mean(lse - tgt_logit)
    return pred, floss, iloss


if __name__ == "__main__":
    B, STATE_DIM, ACTION_DIM, HIDDEN_DIM = 256, 16, 8, 32

    key = jax.random.PRNGKey(0)
    k_p, k_s, k_ns, k_a = jax.random.split(key, 4)

    params = init_params(k_p, STATE_DIM, ACTION_DIM, HIDDEN_DIM)
    state = jax.random.normal(k_s, (B, STATE_DIM), jnp.float32)
    next_state = jax.random.normal(k_ns, (B, STATE_DIM), jnp.float32)
    act_idx = jax.random.randint(k_a, (B,), 0, ACTION_DIM)
    action = jax.nn.one_hot(act_idx, ACTION_DIM, dtype=jnp.float32)

    pred, floss, iloss = icm_forward(state, action, next_state, params,
                                     block_b=64)   # grid of 4 batch blocks
    jax.block_until_ready((pred, floss, iloss))

    # sanity check against a pure-JAX reference using the same bf16 weight path
    pred_r, floss_r, iloss_r = icm_reference(state, action, next_state, params)
    assert jnp.allclose(pred, pred_r, atol=1e-3, rtol=1e-3)
    assert jnp.allclose(floss, floss_r, atol=1e-3, rtol=1e-3)
    assert jnp.allclose(iloss, iloss_r, atol=1e-3, rtol=1e-3)

    print("KERNEL_OK")
</pallas_src>

<mosaic_0001>
module attributes {stable_mosaic.version = 11 : i64} {
  func.func @icm_kernel(%arg0: i32, %arg1: memref<64x16xf32, #tpu.memory_space<vmem>>, %arg2: memref<64x8xf32, #tpu.memory_space<vmem>>, %arg3: memref<64x16xf32, #tpu.memory_space<vmem>>, %arg4: memref<16x64xbf16, #tpu.memory_space<vmem>>, %arg5: memref<8x32xbf16, #tpu.memory_space<vmem>>, %arg6: memref<1x32xf32, #tpu.memory_space<vmem>>, %arg7: memref<32x16xbf16, #tpu.memory_space<vmem>>, %arg8: memref<1x16xf32, #tpu.memory_space<vmem>>, %arg9: memref<16x32xbf16, #tpu.memory_space<vmem>>, %arg10: memref<1x32xf32, #tpu.memory_space<vmem>>, %arg11: memref<32x8xbf16, #tpu.memory_space<vmem>>, %arg12: memref<1x8xf32, #tpu.memory_space<vmem>>, %arg13: memref<64x16xf32, #tpu.memory_space<vmem>>, %arg14: memref<8x128xf32, #tpu.memory_space<vmem>>) attributes {dimension_semantics = [#tpu.dimension_semantics<parallel>], iteration_bounds = array<i64: 4>, scalar_prefetch = 0 : i64, scratch_operands = 0 : i64, tpu.core_type = #tpu.core_type<tc>, window_params = [{transform_indices = @transform_0, window_bounds = array<i64: 64, 16>}, {transform_indices = @transform_1, window_bounds = array<i64: 64, 8>}, {transform_indices = @transform_2, window_bounds = array<i64: 64, 16>}, {pipeline_mode = #tpu.pipeline_mode<synchronous>, transform_indices = @transform_3, window_bounds = array<i64: 16, 64>}, {pipeline_mode = #tpu.pipeline_mode<synchronous>, transform_indices = @transform_4, window_bounds = array<i64: 8, 32>}, {pipeline_mode = #tpu.pipeline_mode<synchronous>, transform_indices = @transform_5, window_bounds = array<i64: 1, 32>}, {pipeline_mode = #tpu.pipeline_mode<synchronous>, transform_indices = @transform_6, window_bounds = array<i64: 32, 16>}, {pipeline_mode = #tpu.pipeline_mode<synchronous>, transform_indices = @transform_7, window_bounds = array<i64: 1, 16>}, {pipeline_mode = #tpu.pipeline_mode<synchronous>, transform_indices = @transform_8, window_bounds = array<i64: 16, 32>}, {pipeline_mode = #tpu.pipeline_mode<synchronous>, transform_indices = @transform_9, window_bounds = array<i64: 1, 32>}, {pipeline_mode = #tpu.pipeline_mode<synchronous>, transform_indices = @transform_10, window_bounds = array<i64: 32, 8>}, {pipeline_mode = #tpu.pipeline_mode<synchronous>, transform_indices = @transform_11, window_bounds = array<i64: 1, 8>}, {transform_indices = @transform_12, window_bounds = array<i64: 64, 16>}, {transform_indices = @transform_13, window_bounds = array<i64: 8, 128>}]} {
    %c0 = arith.constant 0 : index
    %c0_0 = arith.constant 0 : index
    %0 = vector.load %arg1[%c0, %c0_0] : memref<64x16xf32, #tpu.memory_space<vmem>>, vector<64x16xf32>
    %c0_1 = arith.constant 0 : index
    %c0_2 = arith.constant 0 : index
    %1 = vector.load %arg2[%c0_1, %c0_2] : memref<64x8xf32, #tpu.memory_space<vmem>>, vector<64x8xf32>
    %c0_3 = arith.constant 0 : index
    %c0_4 = arith.constant 0 : index
    %2 = vector.load %arg3[%c0_3, %c0_4] : memref<64x16xf32, #tpu.memory_space<vmem>>, vector<64x16xf32>
    %3 = arith.truncf %0 : vector<64x16xf32> to vector<64x16xbf16>
    %4 = arith.truncf %1 : vector<64x8xf32> to vector<64x8xbf16>
    %5 = arith.truncf %2 : vector<64x16xf32> to vector<64x16xbf16>
    %c0_5 = arith.constant 0 : index
    %c0_6 = arith.constant 0 : index
    %6 = vector.load %arg4[%c0_5, %c0_6] : memref<16x64xbf16, #tpu.memory_space<vmem>>, vector<16x64xbf16>
    %cst = arith.constant dense<0.000000e+00> : vector<64x64xf32>
    %7 = tpu.matmul %3, %6, %cst {dimension_numbers = #tpu.dot_dimension_numbers<[1], [0], [0], [1], [0, 0, 1, 1], [], []>} : vector<64x16xbf16>, vector<16x64xbf16>, vector<64x64xf32> -> vector<64x64xf32>
    %8 = vector.extract_strided_slice %7 {offsets = [0, 0], sizes = [64, 32], strides = [1, 1]} : vector<64x64xf32> to vector<64x32xf32>
    %c0_7 = arith.constant 0 : index
    %c0_8 = arith.constant 0 : index
    %9 = vector.load %arg5[%c0_7, %c0_8] : memref<8x32xbf16, #tpu.memory_space<vmem>>, vector<8x32xbf16>
    %cst_9 = arith.constant dense<0.000000e+00> : vector<64x32xf32>
    %10 = tpu.matmul %4, %9, %cst_9 {dimension_numbers = #tpu.dot_dimension_numbers<[1], [0], [0], [1], [0, 0, 1, 1], [], []>} : vector<64x8xbf16>, vector<8x32xbf16>, vector<64x32xf32> -> vector<64x32xf32>
    %11 = arith.addf %8, %10 : vector<64x32xf32>
    %c0_10 = arith.constant 0 : index
    %c0_11 = arith.constant 0 : index
    %12 = vector.load %arg6[%c0_10, %c0_11] : memref<1x32xf32, #tpu.memory_space<vmem>>, vector<1x32xf32>
    %13 = vector.broadcast %12 : vector<1x32xf32> to vector<64x32xf32>
    %14 = arith.addf %11, %13 : vector<64x32xf32>
    %cst_12 = arith.constant 0.000000e+00 : f32
    %15 = vector.broadcast %cst_12 : f32 to vector<64x32xf32>
    %16 = arith.maximumf %14, %15 : vector<64x32xf32>
    %17 = arith.truncf %16 : vector<64x32xf32> to vector<64x32xbf16>
    %c0_13 = arith.constant 0 : index
    %c0_14 = arith.constant 0 : index
    %18 = vector.load %arg7[%c0_13, %c0_14] : memref<32x16xbf16, #tpu.memory_space<vmem>>, vector<32x16xbf16>
    %cst_15 = arith.constant dense<0.000000e+00> : vector<64x16xf32>
    %19 = tpu.matmul %17, %18, %cst_15 {dimension_numbers = #tpu.dot_dimension_numbers<[1], [0], [0], [1], [0, 0, 1, 1], [], []>} : vector<64x32xbf16>, vector<32x16xbf16>, vector<64x16xf32> -> vector<64x16xf32>
    %c0_16 = arith.constant 0 : index
    %c0_17 = arith.constant 0 : index
    %20 = vector.load %arg8[%c0_16, %c0_17] : memref<1x16xf32, #tpu.memory_space<vmem>>, vector<1x16xf32>
    %21 = vector.broadcast %20 : vector<1x16xf32> to vector<64x16xf32>
    %22 = arith.addf %19, %21 : vector<64x16xf32>
    %c0_18 = arith.constant 0 : index
    %c0_19 = arith.constant 0 : index
    %23 = vector.load %arg13[%c0_18, %c0_19] : memref<64x16xf32, #tpu.memory_space<vmem>>, vector<64x16xf32>
    tpu.vector_store %arg13[%c0_18, %c0_19], %22 {strides = array<i32>} : memref<64x16xf32, #tpu.memory_space<vmem>>, vector<64x16xf32>,
    %24 = arith.subf %22, %2 : vector<64x16xf32>
    %25 = arith.mulf %24, %24 : vector<64x16xf32>
    %cst_20 = arith.constant dense<0.000000e+00> : vector<64xf32>
    %26 = vector.multi_reduction <add>, %25, %cst_20 [1] : vector<64x16xf32> to vector<64xf32>
    %27 = vector.shape_cast %26 : vector<64xf32> to vector<64x1xf32>
    %cst_21 = arith.constant dense<0.000000e+00> : vector<1xf32>
    %28 = vector.multi_reduction <add>, %27, %cst_21 [0] : vector<64x1xf32> to vector<1xf32>
    %29 = vector.shape_cast %28 : vector<1xf32> to vector<1x1xf32>
    %30 = vector.extract_strided_slice %7 {offsets = [0, 32], sizes = [64, 32], strides = [1, 1]} : vector<64x64xf32> to vector<64x32xf32>
    %c0_22 = arith.constant 0 : index
    %c0_23 = arith.constant 0 : index
    %31 = vector.load %arg9[%c0_22, %c0_23] : memref<16x32xbf16, #tpu.memory_space<vmem>>, vector<16x32xbf16>
    %cst_24 = arith.constant dense<0.000000e+00> : vector<64x32xf32>
    %32 = tpu.matmul %5, %31, %cst_24 {dimension_numbers = #tpu.dot_dimension_numbers<[1], [0], [0], [1], [0, 0, 1, 1], [], []>} : vector<64x16xbf16>, vector<16x32xbf16>, vector<64x32xf32> -> vector<64x32xf32>
    %33 = arith.addf %30, %32 : vector<64x32xf32>
    %c0_25 = arith.constant 0 : index
    %c0_26 = arith.constant 0 : index
    %34 = vector.load %arg10[%c0_25, %c0_26] : memref<1x32xf32, #tpu.memory_space<vmem>>, vector<1x32xf32>
    %35 = vector.broadcast %34 : vector<1x32xf32> to vector<64x32xf32>
    %36 = arith.addf %33, %35 : vector<64x32xf32>
    %cst_27 = arith.constant 0.000000e+00 : f32
    %37 = vector.broadcast %cst_27 : f32 to vector<64x32xf32>
    %38 = arith.maximumf %36, %37 : vector<64x32xf32>
    %39 = arith.truncf %38 : vector<64x32xf32> to vector<64x32xbf16>
    %c0_28 = arith.constant 0 : index
    %c0_29 = arith.constant 0 : index
    %40 = vector.load %arg11[%c0_28, %c0_29] : memref<32x8xbf16, #tpu.memory_space<vmem>>, vector<32x8xbf16>
    %cst_30 = arith.constant dense<0.000000e+00> : vector<64x8xf32>
    %41 = tpu.matmul %39, %40, %cst_30 {dimension_numbers = #tpu.dot_dimension_numbers<[1], [0], [0], [1], [0, 0, 1, 1], [], []>} : vector<64x32xbf16>, vector<32x8xbf16>, vector<64x8xf32> -> vector<64x8xf32>
    %c0_31 = arith.constant 0 : index
    %c0_32 = arith.constant 0 : index
    %42 = vector.load %arg12[%c0_31, %c0_32] : memref<1x8xf32, #tpu.memory_space<vmem>>, vector<1x8xf32>
    %43 = vector.broadcast %42 : vector<1x8xf32> to vector<64x8xf32>
    %44 = arith.addf %41, %43 : vector<64x8xf32>
    %cst_33 = arith.constant dense<0xFF800000> : vector<64xf32>
    %45 = vector.multi_reduction <maximumf>, %44, %cst_33 [1] : vector<64x8xf32> to vector<64xf32>
    %46 = vector.shape_cast %45 : vector<64xf32> to vector<64x1xf32>
    %47 = vector.broadcast %46 : vector<64x1xf32> to vector<64x8xf32>
    %48 = arith.subf %44, %47 : vector<64x8xf32>
    %49 = math.exp %48 : vector<64x8xf32>
    %cst_34 = arith.constant dense<0.000000e+00> : vector<64xf32>
    %50 = vector.multi_reduction <add>, %49, %cst_34 [1] : vector<64x8xf32> to vector<64xf32>
    %51 = vector.shape_cast %50 : vector<64xf32> to vector<64x1xf32>
    %52 = math.log %51 : vector<64x1xf32>
    %53 = arith.addf %46, %52 : vector<64x1xf32>
    %54 = arith.mulf %44, %1 : vector<64x8xf32>
    %cst_35 = arith.constant dense<0.000000e+00> : vector<64xf32>
    %55 = vector.multi_reduction <add>, %54, %cst_35 [1] : vector<64x8xf32> to vector<64xf32>
    %56 = vector.shape_cast %55 : vector<64xf32> to vector<64x1xf32>
    %57 = arith.subf %53, %56 : vector<64x1xf32>
    %cst_36 = arith.constant dense<0.000000e+00> : vector<1xf32>
    %58 = vector.multi_reduction <add>, %57, %cst_36 [0] : vector<64x1xf32> to vector<1xf32>
    %59 = vector.shape_cast %58 : vector<1xf32> to vector<1x1xf32>
    %60 = tpu.iota {dimensions = array<i32: 1>} : vector<8x128xi32>
    %c0_i32 = arith.constant 0 : i32
    %61 = vector.broadcast %c0_i32 : i32 to vector<8x128xi32>
    %62 = arith.cmpi eq, %60, %61 : vector<8x128xi32>
    %cst_37 = arith.constant 0.000000e+00 : f32
    %63 = vector.shape_cast %29 : vector<1x1xf32> to vector<1x1xf32>
    %64 = vector.broadcast %63 : vector<1x1xf32> to vector<8x128xf32>
    %65 = vector.broadcast %cst_37 : f32 to vector<8x128xf32>
    %66 = arith.select %62, %64, %65 : vector<8x128xi1>, vector<8x128xf32>
    %c1_i32 = arith.constant 1 : i32
    %67 = vector.broadcast %c1_i32 : i32 to vector<8x128xi32>
    %68 = arith.cmpi eq, %60, %67 : vector<8x128xi32>
    %cst_38 = arith.constant 0.000000e+00 : f32
    %69 = vector.shape_cast %59 : vector<1x1xf32> to vector<1x1xf32>
    %70 = vector.broadcast %69 : vector<1x1xf32> to vector<8x128xf32>
    %71 = vector.broadcast %cst_38 : f32 to vector<8x128xf32>
    %72 = arith.select %68, %70, %71 : vector<8x128xi1>, vector<8x128xf32>
    %73 = arith.addf %66, %72 : vector<8x128xf32>
    %c0_39 = arith.constant 0 : index
    %c0_40 = arith.constant 0 : index
    %74 = vector.load %arg14[%c0_39, %c0_40] : memref<8x128xf32, #tpu.memory_space<vmem>>, vector<8x128xf32>
    tpu.vector_store %arg14[%c0_39, %c0_40], %73 {strides = array<i32>} : memref<8x128xf32, #tpu.memory_space<vmem>>, vector<8x128xf32>,
    return
  }
  func.func @transform_0(%arg0: i32) -> (i32, i32) {
    %c0_i32 = arith.constant 0 : i32
    %c0_i32_0 = arith.constant 0 : i32
    return %arg0, %c0_i32 : i32, i32
  }
  func.func @transform_1(%arg0: i32) -> (i32, i32) {
    %c0_i32 = arith.constant 0 : i32
    %c0_i32_0 = arith.constant 0 : i32
    return %arg0, %c0_i32 : i32, i32
  }
  func.func @transform_2(%arg0: i32) -> (i32, i32) {
    %c0_i32 = arith.constant 0 : i32
    %c0_i32_0 = arith.constant 0 : i32
    return %arg0, %c0_i32 : i32, i32
  }
  func.func @transform_3(%arg0: i32) -> (i32, i32) {
    %c0_i32 = arith.constant 0 : i32
    %c0_i32_0 = arith.constant 0 : i32
    %c0_i32_1 = arith.constant 0 : i32
    return %c0_i32, %c0_i32_0 : i32, i32
  }
  func.func @transform_4(%arg0: i32) -> (i32, i32) {
    %c0_i32 = arith.constant 0 : i32
    %c0_i32_0 = arith.constant 0 : i32
    %c0_i32_1 = arith.constant 0 : i32
    return %c0_i32, %c0_i32_0 : i32, i32
  }
  func.func @transform_5(%arg0: i32) -> (i32, i32) {
    %c0_i32 = arith.constant 0 : i32
    %c0_i32_0 = arith.constant 0 : i32
    %c0_i32_1 = arith.constant 0 : i32
    return %c0_i32, %c0_i32_0 : i32, i32
  }
  func.func @transform_6(%arg0: i32) -> (i32, i32) {
    %c0_i32 = arith.constant 0 : i32
    %c0_i32_0 = arith.constant 0 : i32
    %c0_i32_1 = arith.constant 0 : i32
    return %c0_i32, %c0_i32_0 : i32, i32
  }
  func.func @transform_7(%arg0: i32) -> (i32, i32) {
    %c0_i32 = arith.constant 0 : i32
    %c0_i32_0 = arith.constant 0 : i32
    %c0_i32_1 = arith.constant 0 : i32
    return %c0_i32, %c0_i32_0 : i32, i32
  }
  func.func @transform_8(%arg0: i32) -> (i32, i32) {
    %c0_i32 = arith.constant 0 : i32
    %c0_i32_0 = arith.constant 0 : i32
    %c0_i32_1 = arith.constant 0 : i32
    return %c0_i32, %c0_i32_0 : i32, i32
  }
  func.func @transform_9(%arg0: i32) -> (i32, i32) {
    %c0_i32 = arith.constant 0 : i32
    %c0_i32_0 = arith.constant 0 : i32
    %c0_i32_1 = arith.constant 0 : i32
    return %c0_i32, %c0_i32_0 : i32, i32
  }
  func.func @transform_10(%arg0: i32) -> (i32, i32) {
    %c0_i32 = arith.constant 0 : i32
    %c0_i32_0 = arith.constant 0 : i32
    %c0_i32_1 = arith.constant 0 : i32
    return %c0_i32, %c0_i32_0 : i32, i32
  }
  func.func @transform_11(%arg0: i32) -> (i32, i32) {
    %c0_i32 = arith.constant 0 : i32
    %c0_i32_0 = arith.constant 0 : i32
    %c0_i32_1 = arith.constant 0 : i32
    return %c0_i32, %c0_i32_0 : i32, i32
  }
  func.func @transform_12(%arg0: i32) -> (i32, i32) {
    %c0_i32 = arith.constant 0 : i32
    %c0_i32_0 = arith.constant 0 : i32
    return %arg0, %c0_i32 : i32, i32
  }
  func.func @transform_13(%arg0: i32) -> (i32, i32) {
    %c0_i32 = arith.constant 0 : i32
    %c0_i32_0 = arith.constant 0 : i32
    return %arg0, %c0_i32 : i32, i32
  }
}

</mosaic_0001>

<bundles_post_ra>
// kernel: tpu_custom_call.1
= control target key start
LH: loop header
LB: loop body
LE: loop exit
PB: predicated region body
PF: predicated region fallthrough
CT: control target
= control target key end

     0   :  { %s2204_s0 = inlined_call_operand.vmem [shape: f32[256,16], index: 0, kind: input, shape index: {}]   ;;  %s2205_s1 = inlined_call_operand.vmem [shape: f32[256,8], index: 1, kind: input, shape index: {}]   ;;  %s2206_s2 = inlined_call_operand.vmem [shape: f32[256,16], index: 2, kind: input, shape index: {}]   ;;  %s2207_s3 = inlined_call_operand.vmem [shape: bf16[16,64], index: 3, kind: input, shape index: {}]   ;;  %s2208_s4 = inlined_call_operand.vmem [shape: bf16[8,32], index: 4, kind: input, shape index: {}]   ;;  %s2209_s5 = inlined_call_operand.vmem [shape: f32[1,32], index: 5, kind: input, shape index: {}]   ;;  %s2210_s6 = inlined_call_operand.vmem [shape: bf16[32,16], index: 6, kind: input, shape index: {}]   ;;  %s2211_s7 = inlined_call_operand.vmem [shape: f32[1,16], index: 7, kind: input, shape index: {}]   ;;  %s2212_s8 = inlined_call_operand.vmem [shape: bf16[16,32], index: 8, kind: input, shape index: {}]   ;;  %s2213_s9 = inlined_call_operand.vmem [shape: f32[1,32], index: 9, kind: input, shape index: {}]   ;;  %s2214_s10 = inlined_call_operand.vmem [shape: bf16[32,8], index: 10, kind: input, shape index: {}]   ;;  %s2215_s11 = inlined_call_operand.vmem [shape: f32[1,8], index: 11, kind: input, shape index: {}]   ;;  %s2216_s12 = inlined_call_operand.vmem [shape: f32[256,16], index: 12, kind: output, shape index: {0}]   ;;  %s2217_s13 = inlined_call_operand.hbm [shape: f32[32,128], index: 13, kind: output, shape index: {1}]  }
   0x1   :  { %2218 = sst [smem:[#allocation5_spill]] %s2204_s0 }
   0x2   :  { %2219 = sst [smem:[#allocation6_spill]] %s2205_s1 }
   0x3   :  { %2220 = sst [smem:[#allocation7_spill]] %s2207_s3 }
   0x4   :  { %19 = vsyncpa [#allocation3], 0 }
   0x5   :  { %21 = vsyncpa [#allocation3 + $0x1], 0  ;;  %s1803_s25 = smov 0   ;;  %s1805_s26 = smov 0  }
   0x6   :  { %s1807_s27 = smov 0   ;;  %s1809_s28 = smov 0  }
   0x7 LB: > { %s1824_s29 = sadd.s32 4294967295, %s1728_s28   ;;  %s1456_s30 = sadd.s32 4294967294, %s1728_s28   ;;  %s1728_s28 = sphi %s1809_s28, %s2229_s28   ;;  %s1724_s27 = sphi %s1807_s27, %s2228_s27   ;;  %s1720_s26 = sphi %s1805_s26, %s2227_s26   ;;  %s1716_s25 = sphi %s1803_s25, %s2226_s25  }
   0x8   : > { %s1828_s14 = sadd.s32 1, %s1728_s28   ;;  %s327_s15 = sadd.s32 1, %s1724_s27 }
   0x9   : > { %s324_s16 = ssub.s32 %s1728_s28, %s1828_s14  ;;  %p337_p0 = scmp.ne.s32.totalorder %s1724_s27, %s1720_s26 }
   0xa   : > { %p325_p1 = scmp.eq.s32.totalorder %s324_s16, 0  ;;  %p338_p2 = scmp.eq.s32.totalorder %s1824_s29, 3 }
   0xb   : > { %p343_p3 = scmp.ne.s32.totalorder %s1720_s26, %s1716_s25  ;;  %p344_p4 = scmp.eq.s32.totalorder %s1456_s30, 3 }
   0xc   : > { %s1839_s17 = scalar_select %p325_p1, %s1724_s27, %s327_s15  }
   0xd   : > { %p1841_p5 = por %p338_p2, %p337_p0  ;;  %p1845_p6 = por %p344_p4, %p343_p3 }
   0xe   : > { %p1459_p7 = scmp.ge.s32.totalorder %s1728_s28, 1  ;;  %p416_p8 = scmp.lt.s32.totalorder %s1728_s28, 5 }
  0x10   : > { %p417_p9 = pnand %p1459_p7, %p416_p8 }
  0x11   : > { %s2223_s3 = sld [smem:[#allocation7_spill]] (!%p417_p9)  ;;  %s1461_s22 = sshll.u32 (!%p417_p9), %s1824_s29, 3  ;;  %v622_v1 = vld [vmem:[%s2208_s4] sm:$0xf] (!%p417_p9)  ;;  %vm636_vm0 = vcmask (!%p417_p9), 1043456   ;;  %vm544_vm1 = vcmask (!%p417_p9), 130048  }
  0x12   : > { %420 = sbr.rel (%p417_p9) target bundleno = 1106 (0x452), region = 68  ;;  %p476_p10 = scmp.lt.s32.totalorder (!%p417_p9), %s1461_s22, 31  ;;  %v1629_v5 = vld [vmem:[%s2212_s8] sm:$0xff] (!%p417_p9)   ;;  %v638_v11 = vsel (!%p417_p9), %vm636_vm0, %v622_v1, 0  ;;  %vm623_vm2 = vcmask (!%p417_p9), 64512   ;;  %v1631_v41 = vld [vmem:[%s2210_s6 + $0x8] sm:$0xff] (!%p417_p9)  }
  0x13   : > { %s2224_s0 = sld [smem:[#allocation5_spill]] (!%p417_p9)  ;;  %s2225_s1 = sld [smem:[#allocation6_spill]] (!%p417_p9)  ;;  %v1630_v40 = vld [vmem:[%s2210_s6] sm:$0xff] (!%p417_p9)   ;;  %vm763_vm3 = vcmask (!%p417_p9), 261120  }
  0x14   : > { %v1478_v51 = vld [vmem:[%s2209_s5] ss:$0 sm:$0xff] (!%p417_p9)  ;;  %s1730_s15 = smov (!%p417_p9), 32  }
  0x17   : > { %v1628_v0 = vld [vmem:[%s2223_s3] sm:$0xff] (!%p417_p9)   ;;  %s1731_s3 = smov (!%p417_p9), 96  }
  0x18   : > { %1584 = vmatprep.subr.bf16.mxu1 (!%p417_p9), %v1628_v0  ;;  %1530 = vmatprep.subr.bf16.mxu0 (!%p417_p9), %v1628_v0 }
  0x19   : > { %1585 = vmatpush3.bf16.msra.mxu1 %v1628_v0  ;;  %s2231_s22 = smov (!%p476_p10, %s1461_s22), 31  ;;  %1531 = vmatpush3.bf16.msra.mxu0 %v1628_v0 }
  0x1a   : > { %1586 = vmatprep.subr.msk.bf16.mxu1 %vm636_vm0, %v622_v1  ;;  %s1859_s30 = sshll.u32 %s2231_s22, 3  ;;  %1550 = vmatprep.subr.bf16.mxu0 %v1630_v40  ;;  %s472_s22 = sand.u32 1, %s1720_s26  }
  0x1b   : > { %s479_s20 = scalar_lea.vmem %s2224_s0, %s1859_s30  ;;  %s1869_s23 = scalar_lea.vmem %s2225_s1, %s1859_s30 }
  0x1c   : > { %v504_v2 = vld [vmem:[%s479_s20 + $0x20] sm:$0xff]  ;;  %v505_v3 = vld [vmem:[%s479_s20 + $0x28] sm:$0xff]  ;;  %v506_v4 = vld [vmem:[%s479_s20 + $0x30] sm:$0xff]  ;;  %s491_s16 = scalar_lea.vmem %s2206_s2, %s1859_s30  ;;  %s1331_s24 = scalar_lea.sflag [#allocation3], %s472_s22 }
  0x1d   : > { %v526_v6 = vpack.c.bf16 %v505_v3, %v504_v2  ;;  %v507_v7 = vld [vmem:[%s479_s20 + $0x38] sm:$0xff]  ;;  %v500_v8 = vld [vmem:[%s479_s20] sm:$0xff]  ;;  %v501_v9 = vld [vmem:[%s479_s20 + $0x8] sm:$0xff] }
  0x1e   : > { %v527_v10 = vpack.c.bf16 %v507_v7, %v506_v4  ;;  %v524_v12 = vpack.c.bf16 %v501_v9, %v500_v8  ;;  %v1876_v13 = vld [vmem:[%s1869_s23] sm:$0xff]  ;;  %v1879_v14 = vld [vmem:[%s1869_s23 + $0x8] sm:$0xff]  ;;  %v502_v15 = vld [vmem:[%s479_s20 + $0x10] sm:$0xff] }
  0x1f   : > { %1536 = vmatprep.mubr.msk.bf16.mxu1 %vm544_vm1, %v526_v6  ;;  %v528_v16 = vpack.c.bf16 %v1879_v14, %v1876_v13  ;;  %v503_v17 = vld [vmem:[%s479_s20 + $0x18] sm:$0xff]  ;;  %v1888_v19 = vld [vmem:[%s1869_s23 + $0x10] sm:$0xff]  ;;  %v1895_v21 = vld [vmem:[%s1869_s23 + $0x20] sm:$0xff] }
  0x20   : > { %1537 = vmatmul.mubr.msk.bf16.vlgmr.msra.gmra.mrb[0].mxu1 %vm544_vm1, %v527_v10  ;;  %1532 = vmatprep.mubr.msk.bf16.mxu0 %vm544_vm1, %v524_v12  ;;  %v525_v18 = vpack.c.bf16 %v503_v17, %v502_v15  ;;  %v1891_v20 = vld [vmem:[%s1869_s23 + $0x18] sm:$0xff]  ;;  %v1898_v22 = vld [vmem:[%s1869_s23 + $0x28] sm:$0xff]  ;;  %v1911_v25 = vld [vmem:[%s1869_s23 + $0x30] sm:$0xff] }
  0x21   : > { %1541 = vmatpush3.bf16.msra.mxu1 %v638_v11  ;;  %1542 = vmatprep.mubr.msk.bf16.mxu1 %vm623_vm2, %v528_v16  ;;  %v529_v23 = vpack.c.bf16 %v1891_v20, %v1888_v19  ;;  %v530_v24 = vpack.c.bf16 %v1898_v22, %v1895_v21  ;;  %v1914_v26 = vld [vmem:[%s1869_s23 + $0x38] sm:$0xff]  ;;  %v1916_v27 = vld [vmem:[%s491_s16] sm:$0xff]  ;;  %v1918_v28 = vld [vmem:[%s491_s16 + $0x8] sm:$0xff]  ;;  %s497_s23 = scalar_lea.vmem %s2216_s12, %s1859_s30 }
  0x22   : > { %1562 = vmatprep.subr.bf16.mxu1 %v1629_v5  ;;  %1533 = vmatmul.mubr.msk.bf16.vlgmr.msra.gmra.mrb[0].mxu0 %vm544_vm1, %v525_v18  ;;  %v531_v29 = vpack.c.bf16 %v1914_v26, %v1911_v25  ;;  %v532_v30 = vpack.c.bf16 %v1918_v28, %v1916_v27  ;;  %v1926_v31 = vld [vmem:[%s491_s16 + $0x10] sm:$0xff]  ;;  %v1928_v32 = vld [vmem:[%s491_s16 + $0x18] sm:$0xff]  ;;  %v1930_v33 = vld [vmem:[%s491_s16 + $0x20] sm:$0xff] }
  0x23   : > { %v1932_v34 = vld [vmem:[%s491_s16 + $0x28] sm:$0xff]  ;;  %v533_v35 = vpack.c.bf16 %v1928_v32, %v1926_v31  ;;  %v1940_v37 = vld [vmem:[%s491_s16 + $0x30] sm:$0xff]  ;;  %v1942_v38 = vld [vmem:[%s491_s16 + $0x38] sm:$0xff]  ;;  %1551 = vmatpush3.bf16.msra.mxu0 %v1630_v40 }
  0x24   : > { %v534_v36 = vpack.c.bf16 %v1932_v34, %v1930_v33  ;;  %v535_v39 = vpack.c.bf16 %v1942_v38, %v1940_v37  ;;  %1552 = vmatprep.subr.bf16.mxu0 %v1631_v41 }
  0x27   : > { %1553 = vmatpush3.bf16.msra.mxu0 %v1631_v41 }
  0x28   : > { %1543 = vmatmul.mubr.msk.bf16.vlgmr.msra.gmra.mrb[4].mxu1 %vm623_vm2, %v529_v23 }
  0x29   : > { %1563 = vmatpush3.bf16.msra.mxu1 %v1629_v5  ;;  %1546 = vmatprep.mubr.msk.bf16.mxu1 %vm623_vm2, %v530_v24 }
  0x30   : > { %1547 = vmatmul.mubr.msk.bf16.gmra.mrb[8].mxu1 %vm623_vm2, %v531_v29 }
  0x31   : > { %1564 = vmatprep.mubr.msk.bf16.mxu1 %vm544_vm1, %v532_v30 }
  0x38   : > { %1565 = vmatmul.mubr.msk.bf16.vlgmr.msra.gmra.mrb[12].mxu1 %vm544_vm1, %v533_v35 }
  0x39   : > { %1568 = vmatprep.mubr.msk.bf16.mxu1 %vm544_vm1, %v534_v36 }
  0x40   : > { %1569 = vmatmul.mubr.msk.bf16.gmra.mrb[16].mxu1 %vm544_vm1, %v535_v39 }
  0xf3   : > { %v1953_v42 = vpop.f32.mrb[0].mxu1 }
  0xf4   : > { %v1955_v43 = vpop.f32.mrb[1].mxu1 }
  0xf5   : > { %v1957_v44 = vpop.f32.mrb[2].mxu1  ;;  %v1959_v45 = vpop.f32.mrb[0].mxu0 }
  0xf6   : > { %v1961_v46 = vpop.f32.mrb[3].mxu1  ;;  %v1963_v47 = vpop.f32.mrb[1].mxu0 }
  0xf7   : > { %v1965_v48 = vpop.f32.mrb[2].mxu0 }
  0xf8   : > { %v1967_v49 = vpop.f32.mrb[3].mxu0 }
  0xfb   : > { %v1544_v50 = vpop.f32.mrb[4].mxu1 }
  0xfc   : > { %v707_v52 = vadd.f32 %v1544_v50, %v1959_v45  ;;  %v674_v53 = vpop.f32.mrb[5].mxu1 }
  0xfd   : > { %v705_v54 = vadd.f32 %v674_v53, %v1963_v47  ;;  %v1545_v55 = vpop.f32.mrb[6].mxu1 }
  0xfe   : > { %v722_v56 = vadd.f32 %v1478_v51, %v707_v52  ;;  %v708_v57 = vadd.f32 %v1545_v55, %v1965_v48  ;;  %v677_v58 = vpop.f32.mrb[7].mxu1 }
  0xff   : > { %v720_v59 = vadd.f32 %v1478_v51, %v705_v54  ;;  %v706_v60 = vadd.f32 %v677_v58, %v1967_v49 }
 0x100   : > { %v723_v61 = vadd.f32 %v1478_v51, %v708_v57  ;;  %v730_v63 = vmax.f32 %v722_v56, 0.0  ;;  %v1632_v56 = vld [vmem:[%s2214_s10] sm:$0xff]   ;;  %v1633_v57 = vld [vmem:[%s2214_s10 + $0x8] sm:$0xff]  }
 0x101   : > { %v721_v62 = vadd.f32 %v1478_v51, %v706_v60  ;;  %v728_v1 = vmax.f32 %v720_v59, 0.0  ;;  %1572 = vmatprep.subr.bf16.mxu0 %v1632_v56 }
 0x102   : > { %v731_v0 = vmax.f32 %v723_v61, 0.0 }
 0x103   : > { %v729_v2 = vmax.f32 %v721_v62, 0.0  ;;  %v1548_v3 = vpop.f32.mrb[8].mxu1 }
 0x104   : > { %v737_v4 = vpack.c.bf16 %v731_v0, %v730_v63  ;;  %v711_v5 = vadd.f32 %v1548_v3, %v1953_v42  ;;  %v690_v6 = vpop.f32.mrb[9].mxu1 }
 0x105   : > { %v736_v7 = vpack.c.bf16 %v729_v2, %v728_v1  ;;  %v709_v8 = vadd.f32 %v690_v6, %v1955_v43  ;;  %v1549_v9 = vpop.f32.mrb[10].mxu1 }
 0x106   : > { %v726_v10 = vadd.f32 %v1478_v51, %v711_v5  ;;  %v712_v11 = vadd.f32 %v1549_v9, %v1957_v44  ;;  %v693_v12 = vpop.f32.mrb[11].mxu1 }
 0x107   : > { %v724_v15 = vadd.f32 %v1478_v51, %v709_v8  ;;  %v710_v16 = vadd.f32 %v693_v12, %v1961_v46  ;;  %1554 = vmatprep.mubr.msk.bf16.mxu0 %vm763_vm3, %v736_v7 }
 0x108   : > { %v727_v17 = vadd.f32 %v1478_v51, %v712_v11  ;;  %1555 = vmatmul.mubr.msk.bf16.vlgmr.msra.gmra.mrb[4].mxu0 %vm763_vm3, %v737_v4  ;;  %v734_v23 = vmax.f32 %v726_v10, 0.0 }
 0x109   : > { %v725_v18 = vadd.f32 %v1478_v51, %v710_v16  ;;  %v732_v29 = vmax.f32 %v724_v15, 0.0  ;;  %v1491_v51 = vld [vmem:[%s2213_s9] ss:$0 sm:$0xff]  ;;  %1573 = vmatpush3.bf16.msra.mxu0 %v1632_v56 }
 0x10a   : > { %v735_v24 = vmax.f32 %v727_v17, 0.0  ;;  %1574 = vmatprep.subr.bf16.mxu0 %v1633_v57 }
 0x10b   : > { %v733_v30 = vmax.f32 %v725_v18, 0.0  ;;  %v1566_v35 = vpop.f32.mrb[12].mxu1 }
 0x10c   : > { %v739_v36 = vpack.c.bf16 %v735_v24, %v734_v23  ;;  %999 = vrot.lane.b32.xlu1 %v1566_v35, %s1730_s15  ;;  %v956_v39 = vpop.f32.mrb[13].mxu1 }
 0x10d   : > { %v738_v40 = vpack.c.bf16 %v733_v30, %v732_v29  ;;  %995 = vrot.lane.b32.xlu0 %v956_v39, %s1730_s15  ;;  %v1567_v41 = vpop.f32.mrb[14].mxu1  ;;  %1575 = vmatpush3.bf16.msra.mxu0 %v1633_v57 }
 0x10e   : > { %v959_v50 = vpop.f32.mrb[15].mxu1 }
 0x10f   : > { %1558 = vmatprep.mubr.msk.bf16.mxu0 %vm763_vm3, %v738_v40 }
 0x110   : > { %1001 = vrot.lane.b32.xlu1 %v1567_v41, %s1730_s15  ;;  %1559 = vmatmul.mubr.msk.bf16.gmra.mrb[8].mxu0 %vm763_vm3, %v739_v36 }
 0x111   : > { %997 = vrot.lane.b32.xlu0 %v959_v50, %s1730_s15 }
 0x113   : > { %v1570_v52 = vpop.f32.mrb[16].mxu1 }
 0x114   : > { %v972_v53 = vpop.f32.mrb[17].mxu1 }
 0x115   : > { %1033 = vrot.lane.b32.xlu0 %v1491_v51, %s1730_s15  ;;  %1003 = vrot.lane.b32.xlu1 %v972_v53, %s1730_s15  ;;  %v1571_v54 = vpop.f32.mrb[18].mxu1 }
 0x116   : > { %v975_v55 = vpop.f32.mrb[19].mxu1 }
 0x119   : > { %1007 = vrot.lane.b32.xlu1 %v1570_v52, %s1730_s15  ;;  %1005 = vrot.lane.b32.xlu0 %v975_v55, %s1730_s15 }
 0x11d   : > { %1009 = vrot.lane.b32.xlu0 %v1571_v54, %s1730_s15  ;;  %s1500_s15 = sshll.u32 %s1824_s29, 7  ;;  %s1732_s29 = smov [#allocation2]  }
 0x11e   : > { %s2162_s30 = scalar_lea.hbm %s2217_s13, %s1500_s15 }
 0x17e   : > { %v1000_v58 = vpop.permute.xlu1 %999 }
 0x17f   : > { %v996_v59 = vpop.permute.xlu0 %995  ;;  %v1021_v62 = vadd.f32 %v1959_v45, %v1000_v58 }
 0x180   : > { %v1019_v63 = vadd.f32 %v996_v59, %v1963_v47 }
 0x182   : > { %v1002_v60 = vpop.permute.xlu1 %1001 }
 0x183   : > { %v998_v61 = vpop.permute.xlu0 %997  ;;  %v1022_v0 = vadd.f32 %v1965_v48, %v1002_v60 }
 0x184   : > { %v1020_v1 = vadd.f32 %v998_v61, %v1967_v49 }
 0x187   : > { %v1034_v2 = vpop.permute.xlu0 %1033  ;;  %v1004_v3 = vpop.permute.xlu1 %1003 }
 0x188   : > { %v1023_v4 = vadd.f32 %v1004_v3, %v1955_v43  ;;  %v1038_v5 = vadd.f32 %v1034_v2, %v1021_v62  ;;  %v1039_v6 = vadd.f32 %v1034_v2, %v1022_v0  ;;  %v1036_v7 = vadd.f32 %v1034_v2, %v1019_v63 }
 0x189   : > { %v1037_v8 = vadd.f32 %v1034_v2, %v1020_v1 }
 0x18a   : > { %v1046_v9 = vmax.f32 %v1038_v5, 0.0  ;;  %v1047_v10 = vmax.f32 %v1039_v6, 0.0  ;;  %v1044_v11 = vmax.f32 %v1036_v7, 0.0  ;;  %v1040_v16 = vadd.f32 %v1034_v2, %v1023_v4  ;;  %v1492_v4 = vld [vmem:[%s2215_s11] ss:$0 sm:$0xff] }
 0x18b   : > { %v1008_v12 = vpop.permute.xlu1 %1007  ;;  %v1006_v15 = vpop.permute.xlu0 %1005  ;;  %v1045_v45 = vmax.f32 %v1037_v8, 0.0 }
 0x18c   : > { %v1025_v47 = vadd.f32 %v1953_v42, %v1008_v12  ;;  %v1024_v48 = vadd.f32 %v1006_v15, %v1961_v46  ;;  %v1053_v49 = vpack.c.bf16 %v1047_v10, %v1046_v9  ;;  %v1048_v23 = vmax.f32 %v1040_v16, 0.0  ;;  %v1479_v46 = vld [vmem:[%s2211_s7] ss:$0 sm:$0xff] }
 0x18d   : > { %v1052_v17 = vpack.c.bf16 %v1045_v45, %v1044_v11 }
 0x18e   : > { %v1041_v18 = vadd.f32 %v1034_v2, %v1024_v48  ;;  %1073 = vrot.lane.b32.xlu0 %v1053_v49, %s1731_s3  ;;  %v1042_v24 = vadd.f32 %v1034_v2, %v1025_v47 }
 0x18f   : > { %1071 = vrot.lane.b32.xlu1 %v1052_v17, %s1731_s3  ;;  %v1010_v43 = vpop.permute.xlu0 %1009 }
 0x190   : > { %v1049_v29 = vmax.f32 %v1041_v18, 0.0  ;;  %v1026_v30 = vadd.f32 %v1957_v44, %v1010_v43  ;;  %v1050_v39 = vmax.f32 %v1042_v24, 0.0 }
 0x192   : > { %v1043_v35 = vadd.f32 %v1034_v2, %v1026_v30  ;;  %v1054_v36 = vpack.c.bf16 %v1049_v29, %v1048_v23 }
 0x194   : > { %v1051_v40 = vmax.f32 %v1043_v35, 0.0  ;;  %1075 = vrot.lane.b32.xlu1 %v1054_v36, %s1731_s3 }
 0x196   : > { %v1055_v42 = vpack.c.bf16 %v1051_v40, %v1050_v39 }
 0x198   : > { %1077 = vrot.lane.b32.xlu0 %v1055_v42, %s1731_s3  ;;  %s1460_s3 = sshll.u32 %s472_s22, 3 }
 0x199   : > { %s474_s16 = scalar_lea.vmem [#allocation2], %s1460_s3  ;;  %s1670_s3 = sshll.u32 %s1732_s29, 4  ;;  %s1671_s3 = int_to_ptr.vmem [resolvable:$false] %s1670_s3 }
 0x19a   : > { %s1348_s20 = sshll.u32 %s474_s16, 4  ;;  %s1672_s1 = scalar_lea.vmem %s1671_s3, 256  ;;  %s2164_s20 = int_to_ptr.vmem [resolvable:$true] %s1348_s20 }
 0x19b   : > { %s1666_s0 = scalar_lea.vmem %s2164_s20, 128  ;;  %p1673_p0 = scmp.lt.s32.totalorder %s2164_s20, %s1671_s3 }
 0x19c   : > { %p1667_p11 = scmp.ne.s32.totalorder %s2164_s20, %s1666_s0  ;;  %p1674_p1 = scmp.lt.s32.totalorder %s1672_s1, %s1666_s0 }
 0x19e   : > { %p1668_p12 = pnand %p1667_p11, %p1841_p5  ;;  %p1675_p2 = por %p1674_p1, %p1673_p0 }
 0x1a0   : > { %p1669_p13 = pneg %p1668_p12 }
 0x1a2   : > { %p1676_p3 = pnand %p1675_p2, %p1669_p13 }
 0x1db   : > { %v1556_v41 = vpop.f32.mrb[4].mxu0 }
 0x1dc   : > { %v2008_v50 = vadd.f32 %v1556_v41, %v1479_v46  ;;  %v810_v51 = vpop.f32.mrb[5].mxu0 }
 0x1dd   : > { %v811_v44 = vadd.f32 %v1479_v46, %v810_v51  ;;  %v1557_v52 = vpop.f32.mrb[6].mxu0 }
 0x1de   : > { %843 = vst.msk [vmem:[%s497_s23 + $0x10] sm:$0xff] %vm544_vm1, %v2008_v50  ;;  %v2012_v53 = vadd.f32 %v1557_v52, %v1479_v46  ;;  %v813_v54 = vpop.f32.mrb[7].mxu0 }
 0x1df   : > { %841 = vst.msk [vmem:[%s497_s23] sm:$0xff] %vm544_vm1, %v811_v44  ;;  %v814_v55 = vadd.f32 %v1479_v46, %v813_v54  ;;  %v849_v36 = vsub.f32 %v811_v44, %v1916_v27 }
 0x1e0   : > { %844 = vst.msk [vmem:[%s497_s23 + $0x18] sm:$0xff] %vm544_vm1, %v2012_v53 }
 0x1e1   : > { %842 = vst.msk [vmem:[%s497_s23 + $0x8] sm:$0xff] %vm544_vm1, %v814_v55  ;;  %v850_v39 = vsub.f32 %v814_v55, %v1918_v28  ;;  %v857_v54 = vmul.f32 %v849_v36, %v849_v36 }
 0x1e3   : > { %v1560_v56 = vpop.f32.mrb[8].mxu0  ;;  %v858_v27 = vmul.f32 %v850_v39, %v850_v39  ;;  %v865_v28 = vsel %vm544_vm1, %v857_v54, 0.0  ;;  %v851_v54 = vsub.f32 %v2008_v50, %v1926_v31 }
 0x1e4   : > { %v2018_v57 = vadd.f32 %v1560_v56, %v1479_v46  ;;  %v826_v58 = vpop.f32.mrb[9].mxu0 }
 0x1e5   : > { %v2020_v59 = vadd.f32 %v1479_v46, %v826_v58  ;;  %v1561_v60 = vpop.f32.mrb[10].mxu0  ;;  %v868_v44 = vsel %vm544_vm1, %v858_v27, 0.0 }
 0x1e6   : > { %847 = vst.msk [vmem:[%s497_s23 + $0x30] sm:$0xff] %vm544_vm1, %v2018_v57  ;;  %v2024_v61 = vadd.f32 %v1561_v60, %v1479_v46  ;;  %v829_v62 = vpop.f32.mrb[11].mxu0 }
 0x1e7   : > { %845 = vst.msk [vmem:[%s497_s23 + $0x20] sm:$0xff] %vm544_vm1, %v2020_v59  ;;  %v2028_v63 = vadd.f32 %v1479_v46, %v829_v62 }
 0x1e8   : > { %848 = vst.msk [vmem:[%s497_s23 + $0x38] sm:$0xff] %vm544_vm1, %v2024_v61 }
 0x1e9   : > { %846 = vst.msk [vmem:[%s497_s23 + $0x28] sm:$0xff] %vm544_vm1, %v2028_v63 }
 0x200   : > { %v1074_v0 = vpop.permute.xlu0 %1073 }
 0x201   : > { %v1072_v1 = vpop.permute.xlu1 %1071 }
 0x202   : > { %1576 = vmatprep.mubr.msk.bf16.mxu0 %vm763_vm3, %v1072_v1 }
 0x203   : > { %1577 = vmatmul.mubr.msk.bf16.vlgmr.msra.gmra.mrb[12].mxu0 %vm763_vm3, %v1074_v0 }
 0x206   : > { %v1076_v2 = vpop.permute.xlu1 %1075 }
 0x207   : > { %1580 = vmatprep.mubr.msk.bf16.mxu0 %vm763_vm3, %v1076_v2 }
 0x20a   : > { %v1078_v3 = vpop.permute.xlu0 %1077 }
 0x20b   : > { %1581 = vmatmul.mubr.msk.bf16.gmra.mrb[16].mxu0 %vm763_vm3, %v1078_v3 }
 0x2d6   : > { %v1578_v5 = vpop.f32.mrb[12].mxu0 }
 0x2d7   : > { %v1137_v6 = vpop.f32.mrb[13].mxu0  ;;  %v2044_v15 = vadd.f32 %v1578_v5, %v1492_v4 }
 0x2d8   : > { %v1138_v7 = vadd.f32 %v1492_v4, %v1137_v6  ;;  %v1579_v8 = vpop.f32.mrb[14].mxu0 }
 0x2d9   : > { %v1140_v9 = vpop.f32.mrb[15].mxu0  ;;  %v2041_v10 = vadd.f32 %v1579_v8, %v1492_v4  ;;  %v1174_v18 = vsel %vm623_vm2, %v2044_v15, -inf }
 0x2da   : > { %v1141_v11 = vadd.f32 %v1492_v4, %v1140_v9  ;;  %v1168_v12 = vsel %vm623_vm2, %v1138_v7, -inf  ;;  %v1264_v46 = vmul.f32 %v1138_v7, %v1876_v13 }
 0x2db   : > { %1169 = vmax.xlane.f32.xlu1 %v1168_v12  ;;  %v1177_v47 = vsel %vm623_vm2, %v2041_v10, -inf  ;;  %v1267_v50 = vmul.f32 %v2041_v10, %v1891_v20 }
 0x2dc   : > { %v1171_v45 = vsel %vm623_vm2, %v1141_v11, -inf  ;;  %v1265_v41 = vmul.f32 %v1141_v11, %v1879_v14  ;;  %v1272_v51 = vsel %vm623_vm2, %v1264_v46, 0.0 }
 0x2dd   : > { %1172 = vmax.xlane.f32.xlu0 %v1171_v45 }
 0x2de   : > { %v1582_v16 = vpop.f32.mrb[16].mxu0  ;;  %v1275_v52 = vsel %vm623_vm2, %v1265_v41, 0.0 }
 0x2df   : > { %1178 = vmax.xlane.f32.xlu1 %v1177_v47  ;;  %v1153_v48 = vpop.f32.mrb[17].mxu0  ;;  %v2057_v29 = vadd.f32 %v1582_v16, %v1492_v4 }
 0x2e0   : > { %v2049_v49 = vadd.f32 %v1492_v4, %v1153_v48  ;;  %v1583_v17 = vpop.f32.mrb[18].mxu0 }
 0x2e1   : > { %1175 = vmax.xlane.f32.xlu0 %v1174_v18  ;;  %v1156_v43 = vpop.f32.mrb[19].mxu0  ;;  %v2059_v30 = vadd.f32 %v1583_v17, %v1492_v4  ;;  %v1186_v40 = vsel %vm623_vm2, %v2057_v29, -inf }
 0x2e2   : > { %v2053_v23 = vadd.f32 %v1492_v4, %v1156_v43  ;;  %v1180_v24 = vsel %vm623_vm2, %v2049_v49, -inf }
 0x2e3   : > { %v1189_v42 = vsel %vm623_vm2, %v2059_v30, -inf }
 0x2e4   : > { %v1183_v35 = vsel %vm623_vm2, %v2053_v23, -inf }
 0x2e5   : > { %1181 = vmax.xlane.f32.xlu0 %v1180_v24  ;;  %1184 = vmax.xlane.f32.xlu1 %v1183_v35 }
 0x2e9   : > { %1187 = vmax.xlane.f32.xlu0 %v1186_v40  ;;  %1190 = vmax.xlane.f32.xlu1 %v1189_v42 }
 0x2ed   : > { %1273 = vadd.xlane.f32.xlu0 %v1272_v51  ;;  %1276 = vadd.xlane.f32.xlu1 %v1275_v52 }
 0x2f1   : > { %866 = vadd.xlane.f32.xlu0 %v865_v28  ;;  %869 = vadd.xlane.f32.xlu1 %v868_v44 }
 0x368   : > { %v2075_v55 = vpop.xlane.xlu1 %1169 }
 0x369   : > { %v1192_v58 = vsub.f32 %v1138_v7, %v2075_v55 }
 0x36a   : > { %v2077_v13 = vpop.xlane.xlu0 %1172 }
 0x36b   : > { %v1193_v14 = vsub.f32 %v1141_v11, %v2077_v13  ;;  %v1200_v3 = vmul.f32 1.442695, %v1192_v58  ;;  %v852_v58 = vsub.f32 %v2012_v53, %v1928_v32  ;;  %v1281_v32 = vsel %vm623_vm2, %v1267_v50, 0.0 }
 0x36c   : > { %v2080_v56 = vpop.xlane.xlu1 %1178  ;;  %v1268_v53 = vmul.f32 %v2049_v49, %v1895_v21 }
 0x36d   : > { %v1195_v60 = vsub.f32 %v2041_v10, %v2080_v56  ;;  %v1202_v62 = vmul.f32 1.442695, %v1193_v14  ;;  %v1266_v14 = vmul.f32 %v2044_v15, %v1888_v19  ;;  %v860_v19 = vmul.f32 %v852_v58, %v852_v58 }
 0x36e   : > { %v2085_v0 = vpop.xlane.xlu0 %1175  ;;  %v855_v10 = vsub.f32 %v2018_v57, %v1940_v37  ;;  %v1271_v57 = vmul.f32 %v2059_v30, %v1914_v26 }
 0x36f   : > { %v1206_v1 = vmul.f32 1.442695, %v1195_v60  ;;  %v1194_v2 = vsub.f32 %v2044_v15, %v2085_v0  ;;  %v1278_v31 = vsel %vm623_vm2, %v1266_v14, 0.0  ;;  %v854_v15 = vsub.f32 %v2028_v63, %v1932_v34 }
 0x370   : > { %v1270_v63 = vmul.f32 %v2057_v29, %v1911_v25  ;;  %v1293_v25 = vsel %vm623_vm2, %v1271_v57, 0.0 }
 0x371   : > { %1634 = vpow2.f32 %v1206_v1  ;;  %v1204_v4 = vmul.f32 1.442695, %v1194_v2  ;;  %v853_v1 = vsub.f32 %v2020_v59, %v1930_v33  ;;  %v1284_v33 = vsel %vm623_vm2, %v1268_v53, 0.0 }
 0x372   : > { %1636 = vpow2.f32 %v1202_v62  ;;  %v2089_v5 = vpop.xlane.xlu0 %1181  ;;  %v2091_v6 = vpop.xlane.xlu1 %1184  ;;  %v859_v62 = vmul.f32 %v851_v54, %v851_v54  ;;  %v1269_v59 = vmul.f32 %v2053_v23, %v1898_v22  ;;  %v862_v21 = vmul.f32 %v854_v15, %v854_v15 }
 0x373   : > { %1638 = vpow2.f32 %v1204_v4  ;;  %v1196_v7 = vsub.f32 %v2049_v49, %v2089_v5  ;;  %v1197_v8 = vsub.f32 %v2053_v23, %v2091_v6  ;;  %v861_v20 = vmul.f32 %v853_v1, %v853_v1 }
 0x374   : > { %1640 = vpow2.f32 %v1200_v3  ;;  %v871_v2 = vsel %vm544_vm1, %v859_v62, 0.0  ;;  %v874_v3 = vsel %vm544_vm1, %v860_v19, 0.0  ;;  %v1287_v34 = vsel %vm623_vm2, %v1269_v59, 0.0 }
 0x375   : > { %v1208_v16 = vmul.f32 1.442695, %v1196_v7  ;;  %v1210_v17 = vmul.f32 1.442695, %v1197_v8  ;;  %v877_v4 = vsel %vm544_vm1, %v861_v20, 0.0  ;;  %v856_v49 = vsub.f32 %v2024_v61, %v1942_v38 }
 0x376   : > { %v2097_v9 = vpop.xlane.xlu0 %1187  ;;  %v2099_v11 = vpop.xlane.xlu1 %1190  ;;  %v880_v7 = vsel %vm544_vm1, %v862_v21, 0.0  ;;  %v863_v22 = vmul.f32 %v855_v10, %v855_v10  ;;  %v1290_v37 = vsel %vm623_vm2, %v1270_v63, 0.0 }
 0x377   : > { %v1198_v12 = vsub.f32 %v2057_v29, %v2097_v9  ;;  %v1199_v45 = vsub.f32 %v2059_v30, %v2099_v11  ;;  %v864_v8 = vmul.f32 %v856_v49, %v856_v49 }
 0x378   : > { %v883_v23 = vsel %vm544_vm1, %v863_v22, 0.0 }
 0x379   : > { %v1212_v47 = vmul.f32 1.442695, %v1198_v12  ;;  %v1214_v48 = vmul.f32 1.442695, %v1199_v45  ;;  %v886_v38 = vsel %vm544_vm1, %v864_v8, 0.0 }
 0x37a   : > { %v1277_v61 = vpop.xlane.xlu1 %1276  ;;  %v1274_v29 = vpop.xlane.xlu0 %1273 }
 0x37b   : > { %v1635_v18 = vpop.eup %1634  ;;  %1642 = vpow2.f32 %v1212_v47 }
 0x37c   : > { %v1637_v43 = vpop.eup %1636  ;;  %1644 = vpow2.f32 %v1214_v48  ;;  %v1225_v24 = vsel %vm623_vm2, %v1635_v18, 0.0 }
 0x37d   : > { %v1639_v35 = vpop.eup %1638  ;;  %1646 = vpow2.f32 %v1208_v16  ;;  %1226 = vadd.xlane.f32.xlu1 %v1225_v24  ;;  %v1219_v40 = vsel %vm623_vm2, %v1637_v43, 0.0 }
 0x37e   : > { %1648 = vpow2.f32 %v1210_v17  ;;  %v1222_v36 = vsel %vm623_vm2, %v1639_v35, 0.0  ;;  %v1641_v39 = vpop.eup %1640  ;;  %v870_v12 = vpop.xlane.xlu1 %869 }
 0x37f   : > { %1223 = vadd.xlane.f32.xlu0 %v1222_v36  ;;  %v1216_v42 = vsel %vm623_vm2, %v1641_v39, 0.0  ;;  %v867_v45 = vpop.xlane.xlu0 %866 }
 0x381   : > { %1220 = vadd.xlane.f32.xlu1 %v1219_v40 }
 0x383   : > { %1217 = vadd.xlane.f32.xlu0 %v1216_v42 }
 0x385   : > { %v1643_v46 = vpop.eup %1642 }
 0x386   : > { %v1645_v41 = vpop.eup %1644  ;;  %v1234_v51 = vsel %vm623_vm2, %v1643_v46, 0.0 }
 0x387   : > { %v1647_v52 = vpop.eup %1646  ;;  %1235 = vadd.xlane.f32.xlu0 %v1234_v51  ;;  %v1237_v27 = vsel %vm623_vm2, %v1645_v41, 0.0 }
 0x388   : > { %v1649_v28 = vpop.eup %1648  ;;  %1238 = vadd.xlane.f32.xlu1 %v1237_v27  ;;  %v1228_v44 = vsel %vm623_vm2, %v1647_v52, 0.0 }
 0x389   : > { %v1231_v60 = vsel %vm623_vm2, %v1649_v28, 0.0 }
 0x38b   : > { %1229 = vadd.xlane.f32.xlu0 %v1228_v44 }
 0x38c   : > { %1232 = vadd.xlane.f32.xlu1 %v1231_v60 }
 0x38f   : > { %1279 = vadd.xlane.f32.xlu0 %v1278_v31 }
 0x390   : > { %872 = vadd.xlane.f32.xlu1 %v871_v2 }
 0x393   : > { %1282 = vadd.xlane.f32.xlu0 %v1281_v32 }
 0x394   : > { %875 = vadd.xlane.f32.xlu1 %v874_v3  ;;  %v889_v3 = vadd.f32 %v870_v12, %v867_v45 }
 0x397   : > { %1285 = vadd.xlane.f32.xlu0 %v1284_v33 }
 0x398   : > { %878 = vadd.xlane.f32.xlu1 %v877_v4 }
 0x39b   : > { %1288 = vadd.xlane.f32.xlu0 %v1287_v34 }
 0x39c   : > { %881 = vadd.xlane.f32.xlu1 %v880_v7 }
 0x39f   : > { %1291 = vadd.xlane.f32.xlu0 %v1290_v37 }
 0x3a0   : > { %884 = vadd.xlane.f32.xlu1 %v883_v23 }
 0x3a3   : > { %1294 = vadd.xlane.f32.xlu0 %v1293_v25 }
 0x3a4   : > { %887 = vadd.xlane.f32.xlu1 %v886_v38 }
 0x40a   : > { %v1227_v16 = vpop.xlane.xlu1 %1226 }
 0x40c   : > { %v1224_v47 = vpop.xlane.xlu0 %1223 }
 0x40d   : > { %1650 = vlog2.f32 %v1224_v47 }
 0x40e   : > { %v1221_v48 = vpop.xlane.xlu1 %1220 }
 0x40f   : > { %1652 = vlog2.f32 %v1221_v48 }
 0x410   : > { %v1218_v26 = vpop.xlane.xlu0 %1217 }
 0x411   : > { %1654 = vlog2.f32 %v1218_v26 }
 0x412   : > { %1656 = vlog2.f32 %v1227_v16 }
 0x414   : > { %v1236_v30 = vpop.xlane.xlu0 %1235 }
 0x415   : > { %v1239_v17 = vpop.xlane.xlu1 %1238  ;;  %1658 = vlog2.f32 %v1236_v30 }
 0x417   : > { %v1651_v18 = vpop.eup %1650 }
 0x418   : > { %v1230_v43 = vpop.xlane.xlu0 %1229  ;;  %v1245_v36 = vmul.f32 0.6931472, %v1651_v18  ;;  %v1317_v18 = vlaneseq }
 0x419   : > { %v1653_v24 = vpop.eup %1652  ;;  %1660 = vlog2.f32 %v1230_v43  ;;  %v1233_v35 = vpop.xlane.xlu1 %1232 }
 0x41a   : > { %v1243_v39 = vmul.f32 0.6931472, %v1653_v24  ;;  %1662 = vlog2.f32 %v1233_v35  ;;  %v1258_v27 = vadd.f32 %v1245_v36, %v2085_v0  ;;  %v1318_v36 = vand.u32 127, %v1317_v18 }
 0x41b   : > { %v1655_v40 = vpop.eup %1654  ;;  %1664 = vlog2.f32 %v1239_v17 }
 0x41c   : > { %v1257_v42 = vadd.f32 %v1243_v39, %v2077_v13  ;;  %v1241_v46 = vmul.f32 0.6931472, %v1655_v40  ;;  %v1280_v41 = vpop.xlane.xlu0 %1279  ;;  %v1657_v51 = vpop.eup %1656  ;;  %vm1319_vm4 = vcmp.eq.s32.totalorder %v1318_v36, 0  ;;  %vm1321_vm5 = vcmp.eq.s32.totalorder %v1318_v36, 1 }
 0x41d   : > { %v873_v52 = vpop.xlane.xlu1 %872  ;;  %v1247_v28 = vmul.f32 0.6931472, %v1657_v51  ;;  %v1298_v50 = vsub.f32 %v1258_v27, %v1280_v41 }
 0x41e   : > { %v1256_v54 = vadd.f32 %v1241_v46, %v2075_v55  ;;  %v1297_v14 = vsub.f32 %v1257_v42, %v1277_v61  ;;  %v890_v4 = vadd.f32 %v889_v3, %v873_v52 }
 0x41f   : > { %v1659_v62 = vpop.eup %1658  ;;  %v1259_v32 = vadd.f32 %v1247_v28, %v2080_v56 }
 0x420   : > { %v1296_v44 = vsub.f32 %v1256_v54, %v1274_v29  ;;  %v1283_v58 = vpop.xlane.xlu0 %1282  ;;  %v1253_v33 = vmul.f32 0.6931472, %v1659_v62 }
 0x421   : > { %v876_v60 = vpop.xlane.xlu1 %875  ;;  %v1299_v20 = vsub.f32 %v1259_v32, %v1283_v58 }
 0x422   : > { %v1304_v31 = vadd.f32 %v1297_v14, %v1296_v44  ;;  %v891_v22 = vadd.f32 %v890_v4, %v876_v60  ;;  %v1262_v57 = vadd.f32 %v1253_v33, %v2097_v9 }
 0x423   : > { %v1661_v1 = vpop.eup %1660 }
 0x424   : > { %v1663_v2 = vpop.eup %1662  ;;  %v1249_v13 = vmul.f32 0.6931472, %v1661_v1  ;;  %v1305_v19 = vadd.f32 %v1304_v31, %v1298_v50  ;;  %v1286_v53 = vpop.xlane.xlu0 %1285 }
 0x425   : > { %v1251_v15 = vmul.f32 0.6931472, %v1663_v2  ;;  %v879_v55 = vpop.xlane.xlu1 %878  ;;  %v1665_v10 = vpop.eup %1664 }
 0x426   : > { %v1260_v0 = vadd.f32 %v1249_v13, %v2089_v5  ;;  %v1306_v21 = vadd.f32 %v1305_v19, %v1299_v20  ;;  %v1255_v56 = vmul.f32 0.6931472, %v1665_v10  ;;  %v892_v23 = vadd.f32 %v891_v22, %v879_v55 }
 0x427   : > { %v1261_v59 = vadd.f32 %v1251_v15, %v2091_v6 }
 0x428   : > { %v1300_v34 = vsub.f32 %v1260_v0, %v1286_v53  ;;  %v1289_v63 = vpop.xlane.xlu0 %1288  ;;  %v1263_v6 = vadd.f32 %v1255_v56, %v2099_v11 }
 0x429   : > { %v1301_v49 = vsub.f32 %v1261_v59, %v1289_v63  ;;  %v882_v7 = vpop.xlane.xlu1 %881 }
 0x42a   : > { %v1307_v37 = vadd.f32 %v1306_v21, %v1300_v34  ;;  %v893_v61 = vadd.f32 %v892_v23, %v882_v7 }
 0x42c   : > { %v1292_v8 = vpop.xlane.xlu0 %1291  ;;  %v1308_v25 = vadd.f32 %v1307_v37, %v1301_v49 }
 0x42d   : > { %v1302_v5 = vsub.f32 %v1262_v57, %v1292_v8  ;;  %v885_v38 = vpop.xlane.xlu1 %884 }
 0x42e   : > { %v894_v29 = vadd.f32 %v893_v61, %v885_v38 }
 0x42f   : > { %v1309_v45 = vadd.f32 %v1308_v25, %v1302_v5 }
 0x430   : > { %v1295_v12 = vpop.xlane.xlu0 %1294 }
 0x431   : > { %v1303_v16 = vsub.f32 %v1263_v6, %v1295_v12  ;;  %v888_v47 = vpop.xlane.xlu1 %887 }
 0x432   : > { %v895_v48 = vadd.f32 %v894_v29, %v888_v47 }
 0x433   : > { %v1310_v26 = vadd.f32 %v1309_v45, %v1303_v16 }
 0x434   : > { %v896_v30 = vrot.slane %v895_v48, 4 }
 0x435   : > { %v1311_v17 = vrot.slane %v1310_v26, 4 }
 0x436   : > { %v897_v9 = vadd.f32 %v896_v30, %v895_v48 }
 0x437   : > { %v1312_v43 = vadd.f32 %v1311_v17, %v1310_v26 }
 0x438   : > { %v898_v24 = vrot.slane %v897_v9, 2 }
 0x439   : > { %v1313_v35 = vrot.slane %v1312_v43, 2 }
 0x43a   : > { %v899_v39 = vadd.f32 %v898_v24, %v897_v9 }
 0x43b   : > { %v1314_v11 = vadd.f32 %v1313_v35, %v1312_v43 }
 0x43c   : > { %v900_v40 = vrot.slane %v899_v39, 1 }
 0x43d   : > { %v1315_v42 = vrot.slane %v1314_v11, 1 }
 0x43e   : > { %v901_v46 = vadd.f32 %v900_v40, %v899_v39 }
 0x43f   : > { %v1316_v41 = vadd.f32 %v1315_v42, %v1314_v11 }
 0x440   : > { %v1320_v51 = vsel %vm1319_vm4, %v901_v46, 0.0 }
 0x441   : > { %v1322_v52 = vsel %vm1321_vm5, %v1316_v41, 0.0 }
 0x442   : > { %v1323_v54 = vadd.f32 %v1322_v52, %v1320_v51 }
 0x444   : > { %1324 = vst [vmem:[%s474_s16] sm:$0xff] %v1323_v54 }
 0x445   : > { %1679 = shalt.err (!%p1676_p3)
}
 0x446   : > { %s1680_s22 = scalar_lea.hbm %s2162_s30, 128  ;;  %s1684_s21 = scalar_lea.hbm %s2217_s13, 512 }
 0x447   : > { %p1681_p4 = scmp.ne.s32.totalorder %s2162_s30, %s1680_s22  ;;  %p1685_p9 = scmp.lt.u32.totalorder %s2162_s30, %s2217_s13 }
 0x448   : > { %p1686_p10 = scmp.lt.u32.totalorder %s1684_s21, %s1680_s22  ;;  %p1688_p12 = scmp.lt.u32.totalorder %s1680_s22, %s2162_s30 }
 0x449   : > { %p1682_p7 = pnand %p1681_p4, %p1841_p5 }
 0x44a   : > { %p1687_p11 = por %p1686_p10, %p1685_p9 }
 0x44b   : > { %p1683_p8 = pneg %p1682_p7 }
 0x44c   : > { %p1689_p13 = por %p1688_p12, %p1687_p11 }
 0x44e   : > { %p1690_p0 = pnand %p1689_p13, %p1683_p8 }
 0x450   : > { %1693 = shalt.err (!%p1690_p0)
}
 0x451   : > { %1587 = dma.vmem_to_hbm [thread:$0]  (%p1841_p5), %s2164_s20, 128, %s2162_s30, %s1331_s24  }
 0x452 PF: > { %p1593_p1 = scmp.ge.s32.totalorder %s1728_s28, 2  ;;  %s1368_s0 = sand.u32 1, %s1716_s25  }
 0x453   : > { %s1369_s1 = scalar_lea.sflag [#allocation3], %s1368_s0 }
 0x454   : > { %p1590_p2 = pnand %p1593_p1, %p1845_p6 }
 0x456   : > { %1711 = dma.done.wait (!%p1590_p2), %s1369_s1, 128  }
 0x457   : > { %1713 = vsyncadd (!%p1590_p2), %s1369_s1, 4294967168  ;;  %p24_p3 = scmp.ge.s32.totalorder %s1828_s14, 6   ;;  %s2226_s25 = smov %s1720_s26 }
 0x458   : > { %s2227_s26 = smov %s1724_s27  ;;  %s2228_s27 = smov %s1839_s17 }
 0x459   : > { %s2229_s28 = smov %s1828_s14  ;;  %26 = sbr.rel (!%p24_p3) target bundleno = 7 (0x7), region = 121 }
 0x460   :  { %1374 = vsyncpa [#allocation3], 1 }
 0x461   :  { %1376 = vsyncpa [#allocation3 + $0x1], 1 }

</bundles_post_ra>
